<compile_context>
chip_gen: v7x
topology: tpu7x:2x2x1
jax: 0.10.0
libtpu: 0.0.40
codegen_flags: <defaults>
</compile_context>

<pallas_src>
import functools

import jax
import jax.numpy as jnp
from jax.experimental import pallas as pl
from jax.experimental.pallas import tpu as pltpu


_VMEM_LIMIT_BYTES = 48 * 1024 * 1024  # > v5e/v6e scoped defaults, < v7x 64 MiB


# ------------------------------- kernels -------------------------------


def _noisy_linear_train_kernel(x_ref, w_mu_ref, w_sig_ref, eps_in_ref,
                               eps_out_ref, b_ref, o_ref, acc_ref):
    """grid = (F_out_p//tn ["parallel"], F_in_p//tk [reduction, innermost])."""
    k = pl.program_id(1)

    @pl.when(k == 0)
    def _init():
        acc_ref[...] = jnp.zeros_like(acc_ref)

    # Rebuild factorized noise on the VPU: (tk,1)*(1,tn) -> (tk,tn), f32.
    noise = eps_in_ref[...] * eps_out_ref[...]
    w = (w_mu_ref[...].astype(jnp.float32)
         + w_sig_ref[...].astype(jnp.float32) * noise)
    w = w.astype(x_ref.dtype)                      # MXU operand dtype (bf16)

    # Weights stored (F_in, F_out): natural (B,K)x(K,N) contraction, no
    # in-kernel transpose; f32 accumulation.
    acc_ref[...] += jnp.dot(x_ref[...], w, preferred_element_type=jnp.float32)

    @pl.when(k == pl.num_programs(1) - 1)
    def _finalize():
        o_ref[...] = (acc_ref[...] + b_ref[...]).astype(o_ref.dtype)


def _noisy_linear_eval_kernel(x_ref, w_mu_ref, b_ref, o_ref, acc_ref):
    k = pl.program_id(1)

    @pl.when(k == 0)
    def _init():
        acc_ref[...] = jnp.zeros_like(acc_ref)

    acc_ref[...] += jnp.dot(x_ref[...], w_mu_ref[...],
                            preferred_element_type=jnp.float32)

    @pl.when(k == pl.num_programs(1) - 1)
    def _finalize():
        o_ref[...] = (acc_ref[...] + b_ref[...]).astype(o_ref.dtype)


# ------------------------------ helpers --------------------------------


def _round_up(n, m):
    return ((n + m - 1) // m) * m


def _pad2(a, rows, cols):
    r, c = a.shape
    if (r, c) == (rows, cols):
        return a
    return jnp.pad(a, ((0, rows - r), (0, cols - c)))


def _pick_tile(size_p, max_tile):
    """Largest multiple-of-128 divisor of size_p (a 128-multiple) <= max_tile."""
    max_tile = max(128, min(int(max_tile), int(size_p)))
    best = 128
    for t in range(128, max_tile + 1, 128):
        if size_p % t == 0:
            best = t
    return best


# --------------------------- one-time prepare ---------------------------


def prepare_noisy_linear_params(w_mu, w_sigma, b_mu, b_sigma,
                                weight_dtype=jnp.bfloat16):
    """One-time (init / parameter update) preparation.

    Transpose weights to (F_in, F_out), pad to 128-multiples, cast to
    `weight_dtype` (bf16 default). Per-call code never touches weight-sized
    arrays for padding/casting again.
    """
    F_out, F_in = w_mu.shape
    F_in_p = _round_up(F_in, 128)
    F_out_p = _round_up(F_out, 128)
    return dict(
        w_mu_t=_pad2(w_mu.T, F_in_p, F_out_p).astype(weight_dtype),
        w_sigma_t=_pad2(w_sigma.T, F_in_p, F_out_p).astype(weight_dtype),
        b_mu=_pad2(b_mu.reshape(1, F_out).astype(jnp.float32), 1, F_out_p),
        b_sigma=_pad2(b_sigma.reshape(1, F_out).astype(jnp.float32), 1,
                      F_out_p),
        in_features=F_in,
        out_features=F_out,
    )


def prepare_noise(eps_in, eps_out):
    """Once per reset_noise(): pad the factorized noise (kept in f32)."""
    F_in_p = _round_up(eps_in.shape[0], 128)
    F_out_p = _round_up(eps_out.shape[0], 128)
    eps_in_col = _pad2(eps_in.reshape(-1, 1).astype(jnp.float32), F_in_p, 1)
    eps_out_row = _pad2(eps_out.reshape(1, -1).astype(jnp.float32), 1, F_out_p)
    return eps_in_col, eps_out_row


# ------------------------------- forward --------------------------------


@functools.partial(
    jax.jit,
    static_argnames=("in_features", "out_features", "training", "tile_n",
                     "tile_k"))
def _noisy_linear_impl(x, w_mu_t, w_sigma_t, b_mu_row, b_sigma_row,
                       eps_in_col, eps_out_row, *, in_features, out_features,
                       training, tile_n, tile_k):
    B = x.shape[0]
    F_in_p, F_out_p = w_mu_t.shape
    B_p = _round_up(B, 8)                       # f32/bf16 sublane granule
    compute_dtype = w_mu_t.dtype                # MXU operand dtype
    out_dtype = x.dtype

    tk = _pick_tile(F_in_p, tile_k)
    tn = _pick_tile(F_out_p, tile_n)
    # Keep >= 2 N blocks whenever possible so the "parallel" axis shards
    # across v7x's two TensorCores (no effect on single-TC v5e/v6e).
    if F_out_p // tn < 2 and F_out_p >= 256:
        tn = _pick_tile(F_out_p, F_out_p // 2)
    grid = (F_out_p // tn, F_in_p // tk)        # (N parallel, K reduction)

    # Per-call work on x only: pad and cast to the MXU operand dtype.
    x_p = _pad2(x, B_p, F_in_p).astype(compute_dtype)

    x_spec = pl.BlockSpec((B_p, tk), lambda n, k: (0, k))
    w_spec = pl.BlockSpec((tk, tn), lambda n, k: (k, n))
    eps_in_spec = pl.BlockSpec((tk, 1), lambda n, k: (k, 0))
    eps_out_spec = pl.BlockSpec((1, tn), lambda n, k: (0, n))
    b_spec = pl.BlockSpec((1, tn), lambda n, k: (0, n))
    out_spec = pl.BlockSpec((B_p, tn), lambda n, k: (0, n))

    compiler_params = pltpu.CompilerParams(
        dimension_semantics=("parallel", "arbitrary"),
        vmem_limit_bytes=_VMEM_LIMIT_BYTES)

    wbytes = jnp.dtype(compute_dtype).itemsize
    obytes = jnp.dtype(out_dtype).itemsize
    n_blocks = grid[0]
    flops = 2 * B_p * F_in_p * F_out_p

    if training:
        # Fold the bias outside the kernel (O(F_out) VPU work in XLA).
        b_row = b_mu_row + b_sigma_row * eps_out_row
        bytes_accessed = (2 * F_in_p * F_out_p * wbytes
                          + n_blocks * B_p * F_in_p * wbytes
                          + B_p * F_out_p * obytes
                          + 4 * (F_in_p + 2 * F_out_p))
        out = pl.pallas_call(
            _noisy_linear_train_kernel,
            out_shape=jax.ShapeDtypeStruct((B_p, F_out_p), out_dtype),
            grid_spec=pltpu.PrefetchScalarGridSpec(
                num_scalar_prefetch=0,
                grid=grid,
                in_specs=[x_spec, w_spec, w_spec, eps_in_spec, eps_out_spec,
                          b_spec],
                out_specs=out_spec,
                scratch_shapes=[pltpu.VMEM((B_p, tn), jnp.float32)]),
            compiler_params=compiler_params,
            cost_estimate=pl.CostEstimate(
                flops=flops, transcendentals=0,
                bytes_accessed=bytes_accessed),
        )(x_p, w_mu_t, w_sigma_t, eps_in_col, eps_out_row, b_row)
    else:
        bytes_accessed = (F_in_p * F_out_p * wbytes
                          + n_blocks * B_p * F_in_p * wbytes
                          + B_p * F_out_p * obytes
                          + 4 * F_out_p)
        out = pl.pallas_call(
            _noisy_linear_eval_kernel,
            out_shape=jax.ShapeDtypeStruct((B_p, F_out_p), out_dtype),
            grid_spec=pltpu.PrefetchScalarGridSpec(
                num_scalar_prefetch=0,
                grid=grid,
                in_specs=[x_spec, w_spec, b_spec],
                out_specs=out_spec,
                scratch_shapes=[pltpu.VMEM((B_p, tn), jnp.float32)]),
            compiler_params=compiler_params,
            cost_estimate=pl.CostEstimate(
                flops=flops, transcendentals=0,
                bytes_accessed=bytes_accessed),
        )(x_p, w_mu_t, b_mu_row)

    return out[:B, :out_features]


def noisy_linear(x, params, noise, *, training=True, tile_n=512, tile_k=1024):
    """NoisyLinear.forward.  `params` from prepare_noisy_linear_params,
    `noise` = prepare_noise(eps_in, eps_out)."""
    eps_in_col, eps_out_row = noise
    return _noisy_linear_impl(
        x, params["w_mu_t"], params["w_sigma_t"], params["b_mu"],
        params["b_sigma"], eps_in_col, eps_out_row,
        in_features=params["in_features"],
        out_features=params["out_features"],
        training=training, tile_n=tile_n, tile_k=tile_k)


# ------------------- init / noise (matches the module) -------------------


def f_noise(key, size):
    """PyTorch: x = randn(size); x.sign() * x.abs().sqrt()."""
    x = jax.random.normal(key, (size,), dtype=jnp.float32)
    return jnp.sign(x) * jnp.sqrt(jnp.abs(x))


def init_noisy_linear(key, in_features, out_features, std_init=0.1):
    k_wmu, k_bmu = jax.random.split(key)
    mu_range = 1.0 / (in_features ** 0.5)
    sigma_fill = std_init / (in_features ** 0.5)
    w_mu = jax.random.uniform(k_wmu, (out_features, in_features),
                              minval=-mu_range, maxval=mu_range,
                              dtype=jnp.float32)
    w_sigma = jnp.full((out_features, in_features), sigma_fill, jnp.float32)
    b_mu = jax.random.uniform(k_bmu, (out_features,),
                              minval=-mu_range, maxval=mu_range,
                              dtype=jnp.float32)
    b_sigma = jnp.full((out_features,), sigma_fill, jnp.float32)
    return w_mu, w_sigma, b_mu, b_sigma


def reset_noise(key, in_features, out_features):
    k_in, k_out = jax.random.split(key)
    return f_noise(k_in, in_features), f_noise(k_out, out_features)


# ------------------------------ reference -------------------------------


def noisy_linear_ref(x, w_mu, w_sigma, b_mu, b_sigma, eps_in, eps_out,
                     training=True):
    if training:
        W = w_mu + w_sigma * jnp.outer(eps_out, eps_in)
        b = b_mu + b_sigma * eps_out
    else:
        W, b = w_mu, b_mu
    return x @ W.T + b


if __name__ == "__main__":
    key = jax.random.PRNGKey(0)
    k_p1, k_n1, k_x1, k_p2, k_n2, k_x2 = jax.random.split(key, 6)

    # ---- layer 1: lane/sublane-aligned shapes ----
    in_f, out_f, batch = 128, 256, 8
    w_mu, w_sigma, b_mu, b_sigma = init_noisy_linear(k_p1, in_f, out_f, 0.1)
    eps_in, eps_out = reset_noise(k_n1, in_f, out_f)
    x = jax.random.normal(k_x1, (batch, in_f), dtype=jnp.float32)

    noise = prepare_noise(eps_in, eps_out)
    params_bf16 = prepare_noisy_linear_params(w_mu, w_sigma, b_mu, b_sigma)
    params_f32 = prepare_noisy_linear_params(w_mu, w_sigma, b_mu, b_sigma,
                                             weight_dtype=jnp.float32)

    y_ref_tr = noisy_linear_ref(x, w_mu, w_sigma, b_mu, b_sigma,
                                eps_in, eps_out, training=True)
    y_ref_ev = noisy_linear_ref(x, w_mu, w_sigma, b_mu, b_sigma,
                                eps_in, eps_out, training=False)

    # f32-weight path (tolerance covers MXU default-precision f32 matmul).
    y_f32 = jax.block_until_ready(
        noisy_linear(x, params_f32, noise, training=True))
    assert y_f32.shape == (batch, out_f)
    assert jnp.allclose(y_f32, y_ref_tr, atol=1e-2, rtol=1e-2), "f32 train"

    # bf16-weight path (default, the performance configuration).
    y_bf16 = jax.block_until_ready(
        noisy_linear(x, params_bf16, noise, training=True))
    assert jnp.allclose(y_bf16, y_ref_tr, atol=2e-2, rtol=2e-2), "bf16 train"

    y_ev = jax.block_until_ready(
        noisy_linear(x, params_bf16, noise, training=False))
    assert jnp.allclose(y_ev, y_ref_ev, atol=2e-2, rtol=2e-2), "bf16 eval"

    # ---- layer 2: unaligned shapes exercise 128-padding / tile picking ----
    in2, out2, b2 = 96, 200, 5
    w_mu2, w_sigma2, b_mu2, b_sigma2 = init_noisy_linear(k_p2, in2, out2, 0.1)
    eps_in2, eps_out2 = reset_noise(k_n2, in2, out2)
    x2 = jax.random.normal(k_x2, (b2, in2), dtype=jnp.float32)

    noise2 = prepare_noise(eps_in2, eps_out2)
    params2 = prepare_noisy_linear_params(w_mu2, w_sigma2, b_mu2, b_sigma2)
    y2 = jax.block_until_ready(
        noisy_linear(x2, params2, noise2, training=True))
    y2_ref = noisy_linear_ref(x2, w_mu2, w_sigma2, b_mu2, b_sigma2,
                              eps_in2, eps_out2, training=True)
    assert y2.shape == (b2, out2)
    assert jnp.allclose(y2, y2_ref, atol=2e-2, rtol=2e-2), "padded bf16 train"

    print("KERNEL_OK")
</pallas_src>

<mosaic_0001>
module attributes {stable_mosaic.version = 11 : i64} {
  func.func @_noisy_linear_train_kernel(%arg0: i32, %arg1: i32, %arg2: memref<8x128xf32, #tpu.memory_space<vmem>>, %arg3: memref<128x128xf32, #tpu.memory_space<vmem>>, %arg4: memref<128x128xf32, #tpu.memory_space<vmem>>, %arg5: memref<128x1xf32, #tpu.memory_space<vmem>>, %arg6: memref<1x128xf32, #tpu.memory_space<vmem>>, %arg7: memref<1x128xf32, #tpu.memory_space<vmem>>, %arg8: memref<8x128xf32, #tpu.memory_space<vmem>>, %arg9: memref<8x128xf32, #tpu.memory_space<vmem>>) attributes {dimension_semantics = [#tpu.dimension_semantics<parallel>, #tpu.dimension_semantics<arbitrary>], iteration_bounds = array<i64: 2, 1>, scalar_prefetch = 0 : i64, scratch_operands = 1 : i64, tpu.core_type = #tpu.core_type<tc>, window_params = [{transform_indices = @transform_0, window_bounds = array<i64: 8, 128>}, {transform_indices = @transform_1, window_bounds = array<i64: 128, 128>}, {transform_indices = @transform_2, window_bounds = array<i64: 128, 128>}, {transform_indices = @transform_3, window_bounds = array<i64: 128, 1>}, {transform_indices = @transform_4, window_bounds = array<i64: 1, 128>}, {transform_indices = @transform_5, window_bounds = array<i64: 1, 128>}, {transform_indices = @transform_6, window_bounds = array<i64: 8, 128>}]} {
    %c0_i32 = arith.constant 0 : i32
    %0 = arith.cmpi eq, %arg1, %c0_i32 : i32
    %1 = arith.extui %0 : i1 to i32
    %c0_i32_0 = arith.constant 0 : i32
    %2 = arith.cmpi ne, %1, %c0_i32_0 : i32
    scf.if %2 {
      %cst_16 = arith.constant 0.000000e+00 : f32
      %20 = vector.broadcast %cst_16 : f32 to vector<8x128xf32>
      %c0_17 = arith.constant 0 : index
      %c0_18 = arith.constant 0 : index
      %21 = vector.load %arg9[%c0_17, %c0_18] : memref<8x128xf32, #tpu.memory_space<vmem>>, vector<8x128xf32>
      tpu.vector_store %arg9[%c0_17, %c0_18], %20 {strides = array<i32>} : memref<8x128xf32, #tpu.memory_space<vmem>>, vector<8x128xf32>,
    } else {
    }
    %c0 = arith.constant 0 : index
    %c0_1 = arith.constant 0 : index
    %3 = vector.load %arg5[%c0, %c0_1] : memref<128x1xf32, #tpu.memory_space<vmem>>, vector<128x1xf32>
    %c0_2 = arith.constant 0 : index
    %c0_3 = arith.constant 0 : index
    %4 = vector.load %arg6[%c0_2, %c0_3] : memref<1x128xf32, #tpu.memory_space<vmem>>, vector<1x128xf32>
    %5 = vector.broadcast %3 : vector<128x1xf32> to vector<128x128xf32>
    %6 = vector.broadcast %4 : vector<1x128xf32> to vector<128x128xf32>
    %7 = arith.mulf %5, %6 : vector<128x128xf32>
    %c0_4 = arith.constant 0 : index
    %c0_5 = arith.constant 0 : index
    %8 = vector.load %arg3[%c0_4, %c0_5] : memref<128x128xf32, #tpu.memory_space<vmem>>, vector<128x128xf32>
    %c0_6 = arith.constant 0 : index
    %c0_7 = arith.constant 0 : index
    %9 = vector.load %arg4[%c0_6, %c0_7] : memref<128x128xf32, #tpu.memory_space<vmem>>, vector<128x128xf32>
    %10 = arith.mulf %9, %7 : vector<128x128xf32>
    %11 = arith.addf %8, %10 : vector<128x128xf32>
    %c0_8 = arith.constant 0 : index
    %c0_9 = arith.constant 0 : index
    %12 = vector.load %arg9[%c0_8, %c0_9] : memref<8x128xf32, #tpu.memory_space<vmem>>, vector<8x128xf32>
    %c0_10 = arith.constant 0 : index
    %c0_11 = arith.constant 0 : index
    %13 = vector.load %arg2[%c0_10, %c0_11] : memref<8x128xf32, #tpu.memory_space<vmem>>, vector<8x128xf32>
    %cst = arith.constant dense<0.000000e+00> : vector<8x128xf32>
    %14 = tpu.matmul %13, %11, %cst {dimension_numbers = #tpu.dot_dimension_numbers<[1], [0], [0], [1], [0, 0, 1, 1], [], []>} : vector<8x128xf32>, vector<128x128xf32>, vector<8x128xf32> -> vector<8x128xf32>
    %15 = arith.addf %12, %14 : vector<8x128xf32>
    %c0_12 = arith.constant 0 : index
    %c0_13 = arith.constant 0 : index
    %16 = vector.load %arg9[%c0_12, %c0_13] : memref<8x128xf32, #tpu.memory_space<vmem>>, vector<8x128xf32>
    tpu.vector_store %arg9[%c0_12, %c0_13], %15 {strides = array<i32>} : memref<8x128xf32, #tpu.memory_space<vmem>>, vector<8x128xf32>,
    %c0_i32_14 = arith.constant 0 : i32
    %17 = arith.cmpi eq, %arg1, %c0_i32_14 : i32
    %18 = arith.extui %17 : i1 to i32
    %c0_i32_15 = arith.constant 0 : i32
    %19 = arith.cmpi ne, %18, %c0_i32_15 : i32
    scf.if %19 {
      %c0_16 = arith.constant 0 : index
      %c0_17 = arith.constant 0 : index
      %20 = vector.load %arg9[%c0_16, %c0_17] : memref<8x128xf32, #tpu.memory_space<vmem>>, vector<8x128xf32>
      %c0_18 = arith.constant 0 : index
      %c0_19 = arith.constant 0 : index
      %21 = vector.load %arg7[%c0_18, %c0_19] : memref<1x128xf32, #tpu.memory_space<vmem>>, vector<1x128xf32>
      %22 = vector.broadcast %21 : vector<1x128xf32> to vector<8x128xf32>
      %23 = arith.addf %20, %22 : vector<8x128xf32>
      %c0_20 = arith.constant 0 : index
      %c0_21 = arith.constant 0 : index
      %24 = vector.load %arg8[%c0_20, %c0_21] : memref<8x128xf32, #tpu.memory_space<vmem>>, vector<8x128xf32>
      tpu.vector_store %arg8[%c0_20, %c0_21], %23 {strides = array<i32>} : memref<8x128xf32, #tpu.memory_space<vmem>>, vector<8x128xf32>,
    } else {
    }
    return
  }
  func.func @transform_0(%arg0: i32, %arg1: i32) -> (i32, i32) {
    %c0_i32 = arith.constant 0 : i32
    %c0_i32_0 = arith.constant 0 : i32
    return %c0_i32, %arg1 : i32, i32
  }
  func.func @transform_1(%arg0: i32, %arg1: i32) -> (i32, i32) {
    %c0_i32 = arith.constant 0 : i32
    return %arg1, %arg0 : i32, i32
  }
  func.func @transform_2(%arg0: i32, %arg1: i32) -> (i32, i32) {
    %c0_i32 = arith.constant 0 : i32
    return %arg1, %arg0 : i32, i32
  }
  func.func @transform_3(%arg0: i32, %arg1: i32) -> (i32, i32) {
    %c0_i32 = arith.constant 0 : i32
    %c0_i32_0 = arith.constant 0 : i32
    return %arg1, %c0_i32 : i32, i32
  }
  func.func @transform_4(%arg0: i32, %arg1: i32) -> (i32, i32) {
    %c0_i32 = arith.constant 0 : i32
    %c0_i32_0 = arith.constant 0 : i32
    return %c0_i32, %arg0 : i32, i32
  }
  func.func @transform_5(%arg0: i32, %arg1: i32) -> (i32, i32) {
    %c0_i32 = arith.constant 0 : i32
    %c0_i32_0 = arith.constant 0 : i32
    return %c0_i32, %arg0 : i32, i32
  }
  func.func @transform_6(%arg0: i32, %arg1: i32) -> (i32, i32) {
    %c0_i32 = arith.constant 0 : i32
    %c0_i32_0 = arith.constant 0 : i32
    return %c0_i32, %arg0 : i32, i32
  }
}

</mosaic_0001>

<bundles_post_ra>
// kernel: _noisy_linear_impl.1
= control target key start
LH: loop header
LB: loop body
LE: loop exit
PB: predicated region body
PF: predicated region fallthrough
CT: control target
= control target key end

     0   :  { %s1564_s0 = inlined_call_operand.vmem [shape: f32[8,128], index: 0, kind: input, shape index: {}]   ;;  %s1565_s1 = inlined_call_operand.hbm [shape: f32[128,256], index: 1, kind: input, shape index: {}]   ;;  %s1566_s2 = inlined_call_operand.hbm [shape: f32[128,256], index: 2, kind: input, shape index: {}]   ;;  %s1567_s3 = inlined_call_operand.vmem [shape: f32[128,1], index: 3, kind: input, shape index: {}]   ;;  %s1568_s4 = inlined_call_operand.vmem [shape: f32[1,256], index: 4, kind: input, shape index: {}]   ;;  %s1569_s5 = inlined_call_operand.vmem [shape: f32[1,256], index: 5, kind: input, shape index: {}]   ;;  %s1570_s6 = inlined_call_operand.hbm [shape: f32[8,256], index: 6, kind: output, shape index: {}]  }
   0x1   :  { %1576 = sst [smem:[#allocation14_spill]] %s1565_s1 }
   0x2   :  { %11 = vsyncpa [#allocation4], 0 }
   0x3   :  { %13 = vsyncpa [#allocation4 + $0x1], 0 }
   0x4   :  { %14 = vsyncpa [#allocation7], 0 }
   0x5   :  { %16 = vsyncpa [#allocation7 + $0x1], 0 }
   0x6   :  { %17 = vsyncpa [#allocation5], 0 }
   0x7   :  { %19 = vsyncpa [#allocation5 + $0x1], 0  ;;  %s1206_s21 = smov 0   ;;  %s1208_s22 = smov 0  }
   0x8   :  { %s1210_s23 = smov 0   ;;  %s1212_s24 = smov 0  }
   0x9   :  { %s1214_s25 = smov 0   ;;  %s1216_s26 = smov 0  }
   0xa LB: > { %s841_s27 = sadd.s32 4294967295, %s1159_s26   ;;  %s842_s28 = sadd.s32 4294967294, %s1159_s26   ;;  %s1159_s26 = sphi %s1216_s26, %s25_s26   ;;  %s1155_s25 = sphi %s1214_s25, %s1598_s25   ;;  %s1151_s24 = sphi %s1212_s24, %s1597_s24   ;;  %s1147_s23 = sphi %s1210_s23, %s1596_s23   ;;  %s1143_s22 = sphi %s1208_s22, %s1595_s22   ;;  %s1139_s21 = sphi %s1206_s21, %s1594_s21  }
   0xb   : > { %s37_s29 = sadd.s32 1, %s1155_s25  ;;  %s72_s30 = sadd.s32 1, %s1147_s23 }
   0xc   : > { %p39_p0 = scmp.ge.s32.totalorder %s37_s29, 2  ;;  %p79_p1 = scmp.ne.s32.totalorder %s1147_s23, %s1143_s22 }
   0xd   : > { %p80_p2 = scmp.eq.s32.totalorder %s1159_s26, 0  ;;  %p85_p3 = scmp.ne.s32.totalorder %s1143_s22, %s1139_s21 }
   0xe   : > { %s1600_s29 = smov (%p39_p0, %s37_s29), 0  ;;  %p86_p5 = scmp.eq.s32.totalorder %s841_s27, 0 }
   0xf   : > { %1577 = sst [smem:[#allocation12_spill]] %s1600_s29  ;;  %p1247_p4 = por %p80_p2, %p79_p1 }
  0x10   : > { %s68_s8 = ssub.s32 %s1155_s25, %s1600_s29  ;;  %p215_p6 = scmp.eq.s32.totalorder %s841_s27, 1 }
  0x11   : > { %p70_p7 = scmp.eq.s32.totalorder %s68_s8, 0  ;;  %p1253_p8 = por %p86_p5, %p85_p3 }
  0x12   : > { %p1257_p9 = por %p215_p6, %p79_p1  ;;  %p221_p10 = scmp.eq.s32.totalorder %s842_s28, 1 }
  0x13   : > { %s1579_s9 = scalar_select %p1253_p8, 1, 0 }
  0x14   : > { %s1580_s10 = scalar_select %p1257_p9, 1, 0 }
  0x15   : > { %s1262_s11 = scalar_select %p70_p7, %s1147_s23, %s72_s30  }
  0x16   : > { %p1264_p11 = por %p221_p10, %p85_p3  ;;  %p954_p13 = scmp.lt.s32.totalorder %s1159_s26, 2 }
  0x17   : > { %1581 = sst [smem:[#allocation13_spill]] %s1262_s11  ;;  %s1271_s13 = sand.u32 1, %s1147_s23  }
  0x18   : > { %s1582_s12 = scalar_select %p1264_p11, 1, 0 }
  0x19   : > { %s1571_s14 = sshll.u32 %s1271_s13, 7  ;;  %s848_s15 = sshll.u32 %s1155_s25, 7 }
  0x1a   : > { %s1583_s1 = sld [smem:[#allocation14_spill]]  ;;  %s261_s19 = scalar_lea.vmem [#allocation3], %s1571_s14 }
  0x1b   : > { %s270_s20 = sshll.u32 %s261_s19, 4  ;;  %p1288_p0 = pnand %p954_p13, %p1247_p4  ;;  %s1284_s20 = int_to_ptr.vmem [resolvable:$true] %s270_s20 }
  0x1c   : > { %s258_s28 = scalar_lea.sflag [#allocation4], %s1271_s13 }
  0x1d   : > { %p1015_p2 = pneg %p1288_p0 }
  0x20   : > { %s1280_s18 = scalar_lea.hbm %s1583_s1, %s848_s15  ;;  %s1018_s17 = scalar_lea.hbm %s1583_s1, 4096 }
  0x21   : > { %s1013_s30 = scalar_lea.hbm %s1280_s18, 2048  ;;  %p1019_p4 = scmp.lt.u32.totalorder %s1280_s18, %s1583_s1 }
  0x22   : > { %p1014_p1 = scmp.ne.s32.totalorder %s1280_s18, %s1013_s30  ;;  %p1020_p6 = scmp.lt.u32.totalorder %s1018_s17, %s1013_s30 }
  0x23   : > { %p1022_p10 = scmp.lt.u32.totalorder %s1013_s30, %s1280_s18 }
  0x24   : > { %p1016_p3 = pnand %p1015_p2, %p1014_p1  ;;  %p1021_p7 = por %p1020_p6, %p1019_p4 }
  0x26   : > { %p1017_p5 = pneg %p1016_p3  ;;  %p1023_p13 = por %p1022_p10, %p1021_p7 }
  0x28   : > { %p1024_p12 = pnand %p1023_p13, %p1017_p5 }
  0x2a   : > { %1027 = shalt.err (!%p1024_p12)
}
  0x2b   : > { %s1028_s14 = scalar_lea.vmem %s1284_s20, 2048  ;;  %s1161_s8 = smov [#allocation3]  }
  0x2c   : > { %p1029_p1 = scmp.ne.s32.totalorder %s1284_s20, %s1028_s14  ;;  %s1033_s16 = sshll.u32 %s1161_s8, 4  ;;  %s1034_s16 = int_to_ptr.vmem [resolvable:$false] %s1033_s16 }
  0x2d   : > { %s1035_s7 = scalar_lea.vmem %s1034_s16, 4096  ;;  %p1036_p9 = scmp.lt.s32.totalorder %s1284_s20, %s1034_s16 }
  0x2e   : > { %p1031_p3 = pnand %p1029_p1, %p1015_p2  ;;  %p1037_p4 = scmp.lt.s32.totalorder %s1035_s7, %s1028_s14 }
  0x30   : > { %p1032_p11 = pneg %p1031_p3  ;;  %p1038_p6 = por %p1037_p4, %p1036_p9 }
  0x32   : > { %p1039_p7 = pnand %p1038_p6, %p1032_p11 }
  0x34   : > { %1042 = shalt.err (!%p1039_p7)
}
  0x35   : > { %s1574_s30 = smov 256   ;;  %s1163_s17 = smov 128  }
  0x36   : > { %s1164_s19 = smov 8   ;;  %p851_p9 = scmp.ge.s32.totalorder %s1159_s26, 1 }
  0x37   : > { %946 = dma.hbm_to_vmem [thread:$0]  (!%p1288_p0), %s1280_s18, 2048, %s1284_s20, %s258_s28, %s1574_s30, %s1163_s17, %s1164_s19  }
  0x38   : > { %p313_p11 = scmp.lt.s32.totalorder %s1159_s26, 3  ;;  %s1334_s7 = scalar_lea.hbm %s1566_s2, %s848_s15 }
  0x39   : > { %s1586_s1 = sshll.u32 %s1271_s13, 7  ;;  %s281_s18 = scalar_lea.sflag [#allocation7], %s1271_s13 }
  0x3a   : > { %p1325_p12 = pnand %p851_p9, %p313_p11  ;;  %s284_s29 = scalar_lea.vmem [#allocation6], %s1586_s1 }
  0x3b   : > { %s293_s11 = sshll.u32 %s284_s29, 4  ;;  %s1043_s20 = scalar_lea.hbm %s1334_s7, 2048  ;;  %s1338_s11 = int_to_ptr.vmem [resolvable:$true] %s293_s11 }
  0x3c   : > { %p1044_p5 = scmp.ne.s32.totalorder %s1334_s7, %s1043_s20  ;;  %s1048_s15 = scalar_lea.hbm %s1566_s2, 4096 }
  0x3d   : > { %p1049_p1 = scmp.lt.u32.totalorder %s1334_s7, %s1566_s2  ;;  %p1050_p3 = scmp.lt.u32.totalorder %s1048_s15, %s1043_s20 }
  0x3e   : > { %p1046_p10 = pnand %p1044_p5, %p1015_p2  ;;  %p1052_p6 = scmp.lt.u32.totalorder %s1043_s20, %s1334_s7 }
  0x3f   : > { %p1051_p4 = por %p1050_p3, %p1049_p1 }
  0x40   : > { %p1047_p13 = pneg %p1046_p10 }
  0x41   : > { %p1053_p7 = por %p1052_p6, %p1051_p4 }
  0x43   : > { %p1054_p9 = pnand %p1053_p7, %p1047_p13 }
  0x45   : > { %1057 = shalt.err (!%p1054_p9)
}
  0x46   : > { %s1058_s1 = scalar_lea.vmem %s1338_s11, 2048  ;;  %s1165_s29 = smov [#allocation6]  }
  0x47   : > { %p1059_p11 = scmp.ne.s32.totalorder %s1338_s11, %s1058_s1  ;;  %s1063_s28 = sshll.u32 %s1165_s29, 4  ;;  %s1064_s28 = int_to_ptr.vmem [resolvable:$false] %s1063_s28 }
  0x48   : > { %s1065_s30 = scalar_lea.vmem %s1064_s28, 4096  ;;  %p1066_p8 = scmp.lt.s32.totalorder %s1338_s11, %s1064_s28 }
  0x49   : > { %p1061_p5 = pnand %p1059_p11, %p1015_p2  ;;  %p1067_p1 = scmp.lt.s32.totalorder %s1065_s30, %s1058_s1 }
  0x4b   : > { %p1062_p10 = pneg %p1061_p5  ;;  %p1068_p3 = por %p1067_p1, %p1066_p8 }
  0x4d   : > { %p1069_p4 = pnand %p1068_p3, %p1062_p10 }
  0x4f   : > { %1072 = shalt.err (!%p1069_p4)
}
  0x50   : > { %s1587_s20 = smov 256   ;;  %317 = sbr.rel (%p1325_p12) target bundleno = 491 (0x1eb), region = 44 }
  0x51   : > { %949 = dma.hbm_to_vmem [thread:$0]  (!%p1288_p0), %s1334_s7, 2048, %s1338_s11, %s281_s18, %s1587_s20, %s1163_s17, %s1164_s19  }
  0x52   : > { %s1372_s8 = sand.u32 (!%p1325_p12), 1, %s1143_s22   ;;  %p1588_p8 = scmp.ne.s32.totalorder (!%p1325_p12), %s1579_s9, 0 }
  0x53   : > { %s852_s15 = sshll.u32 (!%p1325_p12), %s1372_s8, 7  ;;  %s320_s16 = scalar_lea.sflag (!%p1325_p12), [#allocation4], %s1372_s8 }
  0x54   : > { %s1376_s27 = scalar_lea.vmem (!%p1325_p12), [#allocation3], %s852_s15 }
  0x57   : > { %1126 = dma.done.wait (%p1588_p8), %s320_s16, 2048  }
  0x58   : > { %1128 = vsyncadd (%p1588_p8), %s320_s16, 4294965248  ;;  %s329_s11 = scalar_lea.sflag [#allocation7], %s1372_s8  ;;  %s1383_s13 = scalar_lea.vmem [#allocation6], %s852_s15 }
  0x59   : > { %1130 = dma.done.wait (%p1588_p8), %s329_s11, 2048  }
  0x5a   : > { %1132 = vsyncadd (%p1588_p8), %s329_s11, 4294965248  ;;  %v1166_v0 = vmov 0   ;;  %v406_v1 = vld [vmem:[%s1567_s3 + $0x10] sm:$0xff]  ;;  %v404_v2 = vld [vmem:[%s1567_s3] sm:$0xff]  ;;  %v1167_v9 = vmov 0.0|0.0   ;;  %vm1168_vm0 = vmmov 0  }
  0x5b   : > { %1012 = vset.pattern.permute.xlu1 %v1166_v0  ;;  %1011 = vset.pattern.permute.xlu0 %v1166_v0  ;;  %v407_v3 = vld [vmem:[%s1567_s3 + $0x18] sm:$0xff]  ;;  %v405_v4 = vld [vmem:[%s1567_s3 + $0x8] sm:$0xff]  ;;  %v408_v6 = vld [vmem:[%s1567_s3 + $0x20] sm:$0xff]  ;;  %v1169_v18 = vmov 0.0   ;;  %p393_p0 = scmp.lt.s32.totalorder %s1151_s24, 1  ;;  %s854_s30 = sshll.u32 %s1372_s8, 3 }
  0x5c   : > { %433 = vperm.xlu1 %1012, %v406_v1   ;;  %423 = vperm.xlu0 %1011, %v404_v2   ;;  %v409_v5 = vld [vmem:[%s1567_s3 + $0x28] sm:$0xff]  ;;  %v411_v7 = vld [vmem:[%s1567_s3 + $0x38] sm:$0xff]  ;;  %v410_v8 = vld [vmem:[%s1567_s3 + $0x30] sm:$0xff]  ;;  %s858_s16 = sshll.u32 %s1151_s24, 7  ;;  %s380_s11 = scalar_lea.vmem [#allocation8], %s854_s30 }
  0x5d   : > { %913 = vmatprep.subr.bf16.mxu0 %v1167_v9  ;;  %v413_v10 = vld [vmem:[%s1567_s3 + $0x48] sm:$0xff]  ;;  %v412_v11 = vld [vmem:[%s1567_s3 + $0x40] sm:$0xff]  ;;  %v415_v12 = vld [vmem:[%s1567_s3 + $0x58] sm:$0xff]  ;;  %910 = vmatprep.mubr.msk.f32.mxu0 %vm1168_vm0, %v1169_v18  ;;  %s1440_s18 = scalar_select %p393_p0, %s1151_s24, 1 }
  0x5e   : > { %v414_v13 = vld [vmem:[%s1567_s3 + $0x50] sm:$0xff]  ;;  %v417_v14 = vld [vmem:[%s1567_s3 + $0x68] sm:$0xff]  ;;  %v416_v15 = vld [vmem:[%s1567_s3 + $0x60] sm:$0xff]  ;;  %s688_s17 = sshll.u32 %s380_s11, 4  ;;  %s1515_s7 = scalar_lea.hbm %s1570_s6, %s858_s16  ;;  %s1517_s17 = int_to_ptr.vmem [resolvable:$true] %s688_s17 }
  0x5f   : > { %v419_v16 = vld [vmem:[%s1567_s3 + $0x78] sm:$0xff]  ;;  %v418_v17 = vld [vmem:[%s1567_s3 + $0x70] sm:$0xff]  ;;  %s395_s9 = scalar_lea.vmem %s1568_s4, %s1440_s18  ;;  %v539_v24 = vld [vmem:[%s1383_s13] sm:$0xff]  ;;  %s398_s15 = scalar_lea.vmem %s1569_s5, %s1440_s18 }
  0x60   : > { %438 = vperm.xlu1 %1012, %v407_v3   ;;  %428 = vperm.xlu0 %1011, %v405_v4   ;;  %v1446_v19 = vld [vmem:[%s395_s9] ss:$0 sm:$0xff]  ;;  %v541_v25 = vld [vmem:[%s1383_s13 + $0x10] sm:$0xff]  ;;  %v542_v26 = vld [vmem:[%s1383_s13 + $0x18] sm:$0xff]  ;;  %s675_s1 = scalar_lea.sflag [#allocation5], %s1372_s8  ;;  %s1073_s18 = scalar_lea.vmem %s1517_s17, 128 }
  0x61   : > { %v540_v28 = vld [vmem:[%s1383_s13 + $0x8] sm:$0xff]  ;;  %v523_v34 = vld [vmem:[%s1376_s27] sm:$0xff]  ;;  %v525_v36 = vld [vmem:[%s1376_s27 + $0x10] sm:$0xff]  ;;  %p1074_p2 = scmp.ne.s32.totalorder %s1517_s17, %s1073_s18  ;;  %p1589_p12 = scmp.ne.s32.totalorder %s1580_s10, 0 }
  0x62   : > { %v524_v35 = vld [vmem:[%s1376_s27 + $0x8] sm:$0xff]  ;;  %v526_v37 = vld [vmem:[%s1376_s27 + $0x18] sm:$0xff]  ;;  %v543_v42 = vld [vmem:[%s1383_s13 + $0x20] sm:$0xff]  ;;  %s1170_s24 = smov [#allocation8]  }
  0x63   : > { %v544_v40 = vld [vmem:[%s1383_s13 + $0x28] sm:$0xff]  ;;  %v527_v54 = vld [vmem:[%s1376_s27 + $0x20] sm:$0xff]  ;;  %v546_v55 = vld [vmem:[%s1383_s13 + $0x38] sm:$0xff]  ;;  %p1075_p13 = pnand %p1074_p2, %p1589_p12  ;;  %s1077_s29 = sshll.u32 %s1170_s24, 4  ;;  %s1078_s29 = int_to_ptr.vmem [resolvable:$false] %s1077_s29 }
  0x64   : > { %448 = vperm.xlu1 %1012, %v409_v5   ;;  %443 = vperm.xlu0 %1011, %v408_v6   ;;  %v528_v50 = vld [vmem:[%s1376_s27 + $0x28] sm:$0xff]  ;;  %v545_v57 = vld [vmem:[%s1383_s13 + $0x30] sm:$0xff]  ;;  %v530_v0 = vld [vmem:[%s1376_s27 + $0x38] sm:$0xff]  ;;  %s1079_s9 = scalar_lea.vmem %s1078_s29, 256  ;;  %p1080_p7 = scmp.lt.s32.totalorder %s1517_s17, %s1078_s29 }
  0x65   : > { %v529_v2 = vld [vmem:[%s1376_s27 + $0x30] sm:$0xff]  ;;  %v548_v4 = vld [vmem:[%s1383_s13 + $0x48] sm:$0xff]  ;;  %v547_v6 = vld [vmem:[%s1383_s13 + $0x40] sm:$0xff]  ;;  %p1076_p6 = pneg %p1075_p13  ;;  %p1081_p9 = scmp.lt.s32.totalorder %s1079_s9, %s1073_s18 }
  0x66   : > { %v550_v18 = vld [vmem:[%s1383_s13 + $0x58] sm:$0xff] }
  0x67   : > { %p1082_p11 = por %p1081_p9, %p1080_p7 }
  0x68   : > { %458 = vperm.xlu1 %1012, %v411_v7   ;;  %453 = vperm.xlu0 %1011, %v410_v8  }
  0x69   : > { %p1083_p5 = pnand %p1082_p11, %p1076_p6 }
  0x6c   : > { %468 = vperm.xlu1 %1012, %v413_v10   ;;  %463 = vperm.xlu0 %1011, %v412_v11  }
  0x70   : > { %478 = vperm.xlu1 %1012, %v415_v12   ;;  %473 = vperm.xlu0 %1011, %v414_v13   ;;  %v532_v13 = vld [vmem:[%s1376_s27 + $0x48] sm:$0xff] }
  0x74   : > { %488 = vperm.xlu1 %1012, %v417_v14   ;;  %483 = vperm.xlu0 %1011, %v416_v15  }
  0x78   : > { %498 = vperm.xlu1 %1012, %v419_v16   ;;  %493 = vperm.xlu0 %1011, %v418_v17   ;;  %v531_v17 = vld [vmem:[%s1376_s27 + $0x40] sm:$0xff] }
  0xdb   : > { %v434_v20 = vpop.permute.xlu1 %433  ;;  %v424_v21 = vpop.permute.xlu0 %423 }
  0xdc   : > { %v507_v22 = vmul.f32 %v1446_v19, %v424_v21  ;;  %v509_v23 = vmul.f32 %v1446_v19, %v434_v20  ;;  %v549_v21 = vld [vmem:[%s1383_s13 + $0x50] sm:$0xff] }
  0xde   : > { %v555_v30 = vmul.f32 %v539_v24, %v507_v22  ;;  %v557_v33 = vmul.f32 %v541_v25, %v509_v23 }
  0xdf   : > { %v439_v27 = vpop.permute.xlu1 %438  ;;  %v429_v29 = vpop.permute.xlu0 %428 }
  0xe0   : > { %v510_v31 = vmul.f32 %v1446_v19, %v439_v27  ;;  %v508_v32 = vmul.f32 %v1446_v19, %v429_v29  ;;  %v571_v46 = vadd.f32 %v555_v30, %v523_v34  ;;  %v573_v48 = vadd.f32 %v557_v33, %v525_v36  ;;  %v533_v30 = vld [vmem:[%s1376_s27 + $0x50] sm:$0xff]  ;;  %v551_v34 = vld [vmem:[%s1383_s13 + $0x60] sm:$0xff] }
  0xe2   : > { %v558_v38 = vmul.f32 %v542_v26, %v510_v31  ;;  %v556_v39 = vmul.f32 %v540_v28, %v508_v32  ;;  %v534_v28 = vld [vmem:[%s1376_s27 + $0x58] sm:$0xff]  ;;  %v552_v32 = vld [vmem:[%s1383_s13 + $0x68] sm:$0xff] }
  0xe3   : > { %v449_v41 = vpop.permute.xlu1 %448  ;;  %v444_v43 = vpop.permute.xlu0 %443 }
  0xe4   : > { %v512_v44 = vmul.f32 %v1446_v19, %v449_v41  ;;  %v511_v45 = vmul.f32 %v1446_v19, %v444_v43  ;;  %v572_v47 = vadd.f32 %v556_v39, %v524_v35  ;;  %v574_v49 = vadd.f32 %v558_v38, %v526_v37 }
  0xe6   : > { %v560_v51 = vmul.f32 %v544_v40, %v512_v44  ;;  %v559_v52 = vmul.f32 %v543_v42, %v511_v45  ;;  %v914_v53 = vpack.c.bf16 %v572_v47, %v571_v46  ;;  %v917_v61 = vpack.c.bf16 %v574_v49, %v573_v48  ;;  %v536_v40 = vld [vmem:[%s1376_s27 + $0x68] sm:$0xff]  ;;  %v535_v44 = vld [vmem:[%s1376_s27 + $0x60] sm:$0xff]  ;;  %v554_v45 = vld [vmem:[%s1383_s13 + $0x78] sm:$0xff] }
  0xe7   : > { %v459_v56 = vpop.permute.xlu1 %458  ;;  %v454_v58 = vpop.permute.xlu0 %453  ;;  %v553_v47 = vld [vmem:[%s1383_s13 + $0x70] sm:$0xff] }
  0xe8   : > { %v514_v59 = vmul.f32 %v1446_v19, %v459_v56  ;;  %v513_v60 = vmul.f32 %v1446_v19, %v454_v58  ;;  %915 = vmatpush3.bf16.msra.mxu0 %v914_v53  ;;  %v576_v62 = vadd.f32 %v560_v51, %v528_v50  ;;  %v575_v63 = vadd.f32 %v559_v52, %v527_v54  ;;  %v538_v56 = vld [vmem:[%s1376_s27 + $0x78] sm:$0xff] }
  0xe9   : > { %916 = vmatprep.subr.bf16.mxu0 %v1167_v9 }
  0xea   : > { %v562_v1 = vmul.f32 %v546_v55, %v514_v59  ;;  %v561_v3 = vmul.f32 %v545_v57, %v513_v60  ;;  %v920_v16 = vpack.c.bf16 %v576_v62, %v575_v63  ;;  %v537_v57 = vld [vmem:[%s1376_s27 + $0x70] sm:$0xff]  ;;  %v856_v62 = vld [vmem:[%s398_s15] ss:$0 sm:$0xff] }
  0xeb   : > { %v469_v5 = vpop.permute.xlu1 %468  ;;  %v464_v7 = vpop.permute.xlu0 %463 }
  0xec   : > { %v516_v8 = vmul.f32 %v1446_v19, %v469_v5  ;;  %v515_v10 = vmul.f32 %v1446_v19, %v464_v7  ;;  %918 = vmatpush3.bf16.msra.mxu0 %v917_v61  ;;  %v578_v11 = vadd.f32 %v562_v1, %v530_v0  ;;  %v577_v12 = vadd.f32 %v561_v3, %v529_v2  ;;  %v588_v61 = vld [vmem:[%s1564_s0] sm:$0xff] }
  0xed   : > { %919 = vmatprep.subr.bf16.mxu0 %v1167_v9 }
  0xee   : > { %v564_v14 = vmul.f32 %v548_v4, %v516_v8  ;;  %v563_v15 = vmul.f32 %v547_v6, %v515_v10  ;;  %v923_v25 = vpack.c.bf16 %v578_v11, %v577_v12 }
  0xef   : > { %v479_v20 = vpop.permute.xlu1 %478  ;;  %v474_v22 = vpop.permute.xlu0 %473 }
  0xf0   : > { %v518_v23 = vmul.f32 %v1446_v19, %v479_v20  ;;  %v517_v24 = vmul.f32 %v1446_v19, %v474_v22  ;;  %921 = vmatpush3.bf16.msra.mxu0 %v920_v16  ;;  %v580_v26 = vadd.f32 %v564_v14, %v532_v13  ;;  %v579_v27 = vadd.f32 %v563_v15, %v531_v17 }
  0xf1   : > { %922 = vmatprep.subr.bf16.mxu0 %v1167_v9 }
  0xf2   : > { %v566_v29 = vmul.f32 %v550_v18, %v518_v23  ;;  %v565_v31 = vmul.f32 %v549_v21, %v517_v24  ;;  %v926_v43 = vpack.c.bf16 %v580_v26, %v579_v27 }
  0xf3   : > { %v489_v33 = vpop.permute.xlu1 %488  ;;  %v484_v35 = vpop.permute.xlu0 %483 }
  0xf4   : > { %v520_v36 = vmul.f32 %v1446_v19, %v489_v33  ;;  %v519_v37 = vmul.f32 %v1446_v19, %v484_v35  ;;  %924 = vmatpush3.bf16.msra.mxu0 %v923_v25  ;;  %v582_v38 = vadd.f32 %v566_v29, %v534_v28  ;;  %v581_v39 = vadd.f32 %v565_v31, %v533_v30 }
  0xf5   : > { %925 = vmatprep.subr.bf16.mxu0 %v1167_v9 }
  0xf6   : > { %v568_v41 = vmul.f32 %v552_v32, %v520_v36  ;;  %v567_v42 = vmul.f32 %v551_v34, %v519_v37  ;;  %v929_v51 = vpack.c.bf16 %v582_v38, %v581_v39 }
  0xf7   : > { %v499_v46 = vpop.permute.xlu1 %498  ;;  %v494_v48 = vpop.permute.xlu0 %493 }
  0xf8   : > { %v522_v49 = vmul.f32 %v1446_v19, %v499_v46  ;;  %v521_v50 = vmul.f32 %v1446_v19, %v494_v48  ;;  %927 = vmatpush3.bf16.msra.mxu0 %v926_v43  ;;  %v584_v52 = vadd.f32 %v568_v41, %v536_v40  ;;  %v583_v53 = vadd.f32 %v567_v42, %v535_v44 }
  0xf9   : > { %928 = vmatprep.subr.bf16.mxu0 %v1167_v9 }
  0xfa   : > { %v570_v54 = vmul.f32 %v554_v45, %v522_v49  ;;  %v569_v55 = vmul.f32 %v553_v47, %v521_v50  ;;  %v932_v60 = vpack.c.bf16 %v584_v52, %v583_v53 }
  0xfc   : > { %930 = vmatpush3.bf16.msra.mxu0 %v929_v51  ;;  %v586_v58 = vadd.f32 %v570_v54, %v538_v56  ;;  %v585_v59 = vadd.f32 %v569_v55, %v537_v57 }
  0xfd   : > { %931 = vmatprep.subr.bf16.mxu0 %v1167_v9 }
  0xfe   : > { %v935_v19 = vpack.c.bf16 %v586_v58, %v585_v59 }
 0x100   : > { %933 = vmatpush3.bf16.msra.mxu0 %v932_v60 }
 0x101   : > { %934 = vmatprep.subr.bf16.mxu0 %v1167_v9 }
 0x104   : > { %936 = vmatpush3.bf16.msra.mxu0 %v935_v19 }
 0x107   : > { %911 = vmatmul.mubr.f32.vlgmr.msra.gmra.mrb[0].mxu0 %v588_v61 }
 0x1da   : > { %v655_v63 = vpop.f32.mrb[0].mxu0 }
 0x1db   : > { %v672_v9 = vadd.f32 %v856_v62, %v655_v63  ;;  %v912_v0 = vpop.f32.mrb[1].mxu0 }
 0x1dd   : > { %673 = vst [vmem:[%s380_s11] sm:$0xff] %v672_v9 }
 0x1de   : > { %1086 = shalt.err (!%p1083_p5)
}
 0x1df   : > { %s1087_s8 = scalar_lea.hbm %s1515_s7, 128  ;;  %s1091_s30 = scalar_lea.hbm %s1570_s6, 256 }
 0x1e0   : > { %p1088_p10 = scmp.ne.s32.totalorder %s1515_s7, %s1087_s8  ;;  %p1092_p4 = scmp.lt.u32.totalorder %s1515_s7, %s1570_s6 }
 0x1e1   : > { %p1093_p8 = scmp.lt.u32.totalorder %s1091_s30, %s1087_s8  ;;  %p1095_p2 = scmp.lt.u32.totalorder %s1087_s8, %s1515_s7 }
 0x1e2   : > { %p1089_p1 = pnand %p1088_p10, %p1589_p12 }
 0x1e3   : > { %p1094_p0 = por %p1093_p8, %p1092_p4 }
 0x1e4   : > { %p1090_p3 = pneg %p1089_p1 }
 0x1e5   : > { %p1096_p13 = por %p1095_p2, %p1094_p0 }
 0x1e7   : > { %p1097_p6 = pnand %p1096_p13, %p1090_p3 }
 0x1e9   : > { %1100 = shalt.err (!%p1097_p6)
}
 0x1ea   : > { %941 = dma.vmem_to_hbm [thread:$0]  (%p1589_p12), %s1517_s17, 128, %s1515_s7, %s675_s1  }
 0x1eb PF: > { %s700_s15 = sand.u32 1, %s1139_s21   ;;  %p1590_p7 = scmp.ne.s32.totalorder %s1582_s12, 0 }
 0x1ec   : > { %p1591_p9 = scmp.ge.s32.totalorder %s1159_s26, 2  ;;  %s701_s16 = scalar_lea.sflag [#allocation5], %s700_s15 }
 0x1ee   : > { %p951_p11 = pnand %p1591_p9, %p1590_p7 }
 0x1f0   : > { %1134 = dma.done.wait (!%p951_p11), %s701_s16, 128  }
 0x1f1   : > { %1136 = vsyncadd (!%p951_p11), %s701_s16, 4294967168  ;;  %s25_s26 = sadd.s32 1, %s1159_s26   ;;  %s1592_s10 = sld [smem:[#allocation13_spill]] }
 0x1f2   : > { %p22_p5 = scmp.ge.s32.totalorder %s25_s26, 4   ;;  %s1593_s11 = sld [smem:[#allocation12_spill]] }
 0x1f3   : > { %s1594_s21 = smov %s1143_s22  ;;  %s1595_s22 = smov %s1147_s23 }
 0x1f4   : > { %s1597_s24 = smov %s1155_s25  ;;  %24 = sbr.rel (!%p22_p5) target bundleno = 10 (0xa), region = 122 }
 0x1f7   : > { %s1596_s23 = smov %s1592_s10 }
 0x1f8   : > { %s1598_s25 = smov %s1593_s11 }
 0x1fb   :  { %706 = vsyncpa [#allocation4], 1 }
 0x1fc   :  { %708 = vsyncpa [#allocation4 + $0x1], 1 }
 0x1fd   :  { %709 = vsyncpa [#allocation7], 1 }
 0x1fe   :  { %711 = vsyncpa [#allocation7 + $0x1], 1 }
 0x1ff   :  { %712 = vsyncpa [#allocation5], 1 }
 0x200   :  { %714 = vsyncpa [#allocation5 + $0x1], 1 }

</bundles_post_ra>
